<compile_context>
chip_gen: v7x
topology: tpu7x:2x2x1
jax: 0.10.0
libtpu: 0.0.40
codegen_flags: <defaults>
</compile_context>

<pallas_src>
import math
import functools
import jax
import jax.numpy as jnp
from jax import lax
from jax.experimental import pallas as pl
from jax.experimental.pallas import tpu as pltpu


_SCOPED_VMEM_DEFAULT = 32 * 1024 * 1024   # conservative scoped-VMEM default (v6e/v7x)


def _pick_tile(n, preferred=256):
    """Largest tile <= preferred that divides n (full extent if n is small)."""
    if n <= preferred:
        return n
    for t in (256, 128, 64, 32, 16, 8):
        if t <= preferred and n % t == 0:
            return t
    # TODO(synk): pad/mask tile path for awkward lengths (currently one full tile).
    return n


def _resident_spec(block_shape, index_map, nbytes):
    """BlockSpec for a VMEM-resident (constant index_map) operand.

    Large resident weights are single-buffered (pl.Buffered(1)) so the pipeline
    does not double-buffer them -- halves their VMEM footprint (matters on v7x,
    64 MiB VMEM).  Small operands keep default double-buffering (harmless).
    """
    if nbytes >= (1 << 20):
        return pl.BlockSpec(block_shape, index_map, pipeline_mode=pl.Buffered(1))
    return pl.BlockSpec(block_shape, index_map)


def _compiler_params(semantics, vmem_estimate_bytes):
    vmem_limit = None
    if vmem_estimate_bytes > _SCOPED_VMEM_DEFAULT:
        vmem_limit = int(min(vmem_estimate_bytes * 5 // 4, 96 * 1024 * 1024))
    return pltpu.CompilerParams(dimension_semantics=semantics,
                                vmem_limit_bytes=vmem_limit)


# ---------------------------------------------------------------------------
# Kernel 1: fused QKV projection over flattened (B*T, C) rows
#   qkv = x_tile @ Wqkv   (Wqkv = [Wq.T/sqrt(hs) | Wk.T | Wv.T], VMEM resident)
#   q/k/v written as lane-dense (tm, C) slabs (no per-head relayout).
# ---------------------------------------------------------------------------
def _qkv_kernel(x_ref, w_ref, q_ref, k_ref, v_ref):
    x = x_ref[...]                                               # (tm, C)
    qkv = jnp.dot(x, w_ref[...], preferred_element_type=jnp.float32)  # (tm, 3C)
    qkv = qkv.astype(q_ref.dtype)
    C = x.shape[1]
    q_ref[...] = qkv[:, :C]          # lane-dense, full-width stores
    k_ref[...] = qkv[:, C:2 * C]
    v_ref[...] = qkv[:, 2 * C:]


def _qkv_projection(x_flat, w_qkv, row_tile=256):
    R, C = x_flat.shape
    tm = _pick_tile(R, row_tile)
    itemsize = jnp.dtype(x_flat.dtype).itemsize
    w_bytes = int(w_qkv.size) * jnp.dtype(w_qkv.dtype).itemsize
    vmem_est = (w_bytes                         # resident weight (single-buffered)
                + 2 * tm * C * itemsize         # double-buffered x tile
                + 3 * 2 * tm * C * itemsize     # double-buffered q/k/v tiles
                + tm * 3 * C * 4)               # f32 matmul intermediate
    out_shape = jax.ShapeDtypeStruct((R, C), x_flat.dtype)
    out_spec = pl.BlockSpec((tm, C), lambda i: (i, 0))
    return pl.pallas_call(
        _qkv_kernel,
        out_shape=(out_shape, out_shape, out_shape),
        grid_spec=pltpu.PrefetchScalarGridSpec(
            num_scalar_prefetch=0,
            grid=(R // tm,),
            in_specs=[
                pl.BlockSpec((tm, C), lambda i: (i, 0)),
                _resident_spec((C, 3 * C), lambda i: (0, 0), w_bytes),
            ],
            out_specs=(out_spec, out_spec, out_spec),
        ),
        compiler_params=_compiler_params(("parallel",), vmem_est),
    )(x_flat, w_qkv)


# ---------------------------------------------------------------------------
# Kernel 2: flash attention (online softmax over KV tiles), all heads processed
#           per grid step, with fused output projection + bias.
#   grid = (B, T//tq, T//tk)   semantics = (parallel, parallel, arbitrary)
# ---------------------------------------------------------------------------
def _flash_kernel(q_ref, k_ref, v_ref, wp_ref, bias_ref, o_ref,
                  m_sc, l_sc, acc_sc, *, n_head):
    qi = pl.program_id(1)
    kv = pl.program_id(2)
    n_kv = pl.num_programs(2)
    tq = q_ref.shape[1]
    tk = k_ref.shape[1]
    C = q_ref.shape[2]
    hs = C // n_head

    @pl.when(kv == 0)
    def _():
        m_sc[...] = jnp.full_like(m_sc, -jnp.inf)
        l_sc[...] = jnp.zeros_like(l_sc)
        acc_sc[...] = jnp.zeros_like(acc_sc)

    def update(apply_mask):
        q = q_ref[0]                                 # (tq, C); 1/sqrt(hs) folded in Wq
        k = k_ref[0]                                 # (tk, C)
        v = v_ref[0]                                 # (tk, C)
        if apply_mask:                               # only diagonal blocks pay for this
            row = qi * tq + lax.broadcasted_iota(jnp.int32, (tq, tk), 0)
            col = kv * tk + lax.broadcasted_iota(jnp.int32, (tq, tk), 1)
            keep = col <= row
        for h in range(n_head):                      # static unroll over heads
            sl = slice(h * hs, (h + 1) * hs)
            # Contract last dims directly -- no (tk, hs) transpose materialized.
            s = lax.dot_general(q[:, sl], k[:, sl], (((1,), (1,)), ((), ())),
                                preferred_element_type=jnp.float32)   # (tq, tk)
            if apply_mask:
                s = jnp.where(keep, s, -jnp.inf)
            m_prev = m_sc[h]                                         # (tq, 1)
            m_new = jnp.maximum(m_prev, jnp.max(s, axis=-1, keepdims=True))
            alpha = jnp.exp(m_prev - m_new)
            p = jnp.exp(s - m_new)
            l_sc[h] = alpha * l_sc[h] + jnp.sum(p, axis=-1, keepdims=True)
            acc_sc[:, sl] = alpha * acc_sc[:, sl] + jnp.dot(
                p.astype(v.dtype), v[:, sl], preferred_element_type=jnp.float32)
            m_sc[h] = m_new

    # Causal tiling: blocks strictly above the diagonal do no compute (and the
    # clamped K/V index_maps already suppress their DMA); fully-visible blocks
    # skip the masking work; only diagonal blocks mask.
    fully_visible = (kv + 1) * tk - 1 <= qi * tq
    on_diagonal = (kv * tk < (qi + 1) * tq) & jnp.logical_not(fully_visible)

    @pl.when(fully_visible)
    def _():
        update(apply_mask=False)

    @pl.when(on_diagonal)
    def _():
        update(apply_mask=True)

    # Epilogue: normalize each head (exact reciprocal), then one fused
    # (tq, C) @ (C, C) output projection + bias, one lane-dense (tq, C) store.
    @pl.when(kv == n_kv - 1)
    def _():
        for h in range(n_head):
            sl = slice(h * hs, (h + 1) * hs)
            acc_sc[:, sl] = acc_sc[:, sl] * (1.0 / l_sc[h])
        y = acc_sc[...].astype(wp_ref.dtype)
        out = jnp.dot(y, wp_ref[...], preferred_element_type=jnp.float32)
        o_ref[0] = (out + bias_ref[...]).astype(o_ref.dtype)


def _flash_attention_fused_proj(q, k, v, wp, bias, n_head, out_dtype,
                                q_tile=256, kv_tile=256):
    B, T, C = q.shape
    tq = _pick_tile(T, q_tile)
    tk = _pick_tile(T, kv_tile)

    def kv_index_map(b, qi, kv):
        # Clamp so causally-skipped KV blocks revisit the already-resident block
        # and issue no new DMA (halves K/V HBM traffic for causal attention).
        last_needed = ((qi + 1) * tq - 1) // tk
        return (b, jnp.minimum(kv, last_needed), 0)

    itemsize = jnp.dtype(q.dtype).itemsize
    wp_bytes = int(wp.size) * jnp.dtype(wp.dtype).itemsize
    bias_bytes = int(bias.size) * jnp.dtype(bias.dtype).itemsize
    vmem_est = (wp_bytes + bias_bytes                # resident Wp / bias
                + 2 * (tq + 2 * tk) * C * itemsize   # double-buffered q/k/v tiles
                + 2 * tq * C * itemsize              # double-buffered output tile
                + tq * C * 4 + 2 * n_head * tq * 4   # acc / m / l scratch
                + 3 * tq * tk * 4)                   # headroom for s/p temporaries

    kernel = functools.partial(_flash_kernel, n_head=n_head)
    return pl.pallas_call(
        kernel,
        out_shape=jax.ShapeDtypeStruct((B, T, C), out_dtype),
        grid_spec=pltpu.PrefetchScalarGridSpec(
            num_scalar_prefetch=0,
            grid=(B, T // tq, T // tk),
            in_specs=[
                pl.BlockSpec((1, tq, C), lambda b, qi, kv: (b, qi, 0)),
                pl.BlockSpec((1, tk, C), kv_index_map),
                pl.BlockSpec((1, tk, C), kv_index_map),
                _resident_spec((C, C), lambda b, qi, kv: (0, 0), wp_bytes),
                _resident_spec((1, C), lambda b, qi, kv: (0, 0), bias_bytes),
            ],
            out_specs=pl.BlockSpec((1, tq, C), lambda b, qi, kv: (b, qi, 0)),
            scratch_shapes=[
                pltpu.VMEM((n_head, tq, 1), jnp.float32),   # running max m
                pltpu.VMEM((n_head, tq, 1), jnp.float32),   # running denom l
                pltpu.VMEM((tq, C), jnp.float32),           # unnormalized per-head acc
            ],
        ),
        # B and T/tq are the "parallel" axes -> B*(T/tq) >= 2 keeps both v7x
        # TensorCores busy; kv is a sequential reduction ("arbitrary").
        compiler_params=_compiler_params(("parallel", "parallel", "arbitrary"),
                                         vmem_est),
    )(q, k, v, wp, bias)


# ---------------------------------------------------------------------------
# Module wrapper
# ---------------------------------------------------------------------------
class MultiHeadAttentionPallas:
    """Causal multi-head self-attention (eval mode) backed by Pallas TPU kernels.

    Matches the PyTorch module:  per-head softmax(q k^T / sqrt(hs)) v with a
    causal mask, followed by the output projection (Wp, bias).  Dropout layers
    are identity in eval mode.  On v6e/v7x, compute_dtype=jnp.bfloat16 is
    recommended for the matmul operands (softmax/accumulation stays f32).
    """

    def __init__(self, n_embd, n_head, dropout, block_size, key,
                 compute_dtype=jnp.float32):
        assert n_embd % n_head == 0
        self.n_embd = n_embd
        self.n_head = n_head
        self.head_size = n_embd // n_head
        self.block_size = block_size
        self.dropout = dropout               # identity in eval mode
        self.compute_dtype = compute_dtype

        k1, k2, k3, k4, k5 = jax.random.split(key, 5)
        bound = 1.0 / math.sqrt(n_embd)      # PyTorch nn.Linear default init range
        # nn.Linear weight is (out, in); y = x @ W.T
        self.Wk = jax.random.uniform(k1, (n_embd, n_embd), jnp.float32, -bound, bound)
        self.Wq = jax.random.uniform(k2, (n_embd, n_embd), jnp.float32, -bound, bound)
        self.Wv = jax.random.uniform(k3, (n_embd, n_embd), jnp.float32, -bound, bound)
        self.Wp = jax.random.uniform(k4, (n_embd, n_embd), jnp.float32, -bound, bound)
        self.bp = jax.random.uniform(k5, (n_embd,), jnp.float32, -bound, bound)

        # Kernel-side layouts, precomputed ONCE.
        scale = 1.0 / math.sqrt(self.head_size)
        # Fused QKV weight (C, 3C) = [ Wq.T * scale | Wk.T | Wv.T ]
        self._w_qkv = jnp.concatenate(
            [self.Wq.T * scale, self.Wk.T, self.Wv.T], axis=1).astype(compute_dtype)
        self._wp = self.Wp.T.astype(compute_dtype)                     # (C, C)
        self._bias = self.bp.reshape(1, self.n_embd).astype(jnp.float32)

    def __call__(self, x):
        B, T, C = x.shape
        assert C == self.n_embd and T <= self.block_size
        xc = x.astype(self.compute_dtype)
        q, k, v = _qkv_projection(xc.reshape(B * T, C), self._w_qkv)
        q = q.reshape(B, T, C)
        k = k.reshape(B, T, C)
        v = v.reshape(B, T, C)
        return _flash_attention_fused_proj(q, k, v, self._wp, self._bias,
                                           n_head=self.n_head,
                                           out_dtype=self.compute_dtype)

    # pure-JAX f32 reference for validation
    def reference(self, x):
        B, T, C = x.shape
        nh, hs = self.n_head, self.head_size
        q = (x @ self.Wq.T).reshape(B, T, nh, hs).transpose(0, 2, 1, 3)
        k = (x @ self.Wk.T).reshape(B, T, nh, hs).transpose(0, 2, 1, 3)
        v = (x @ self.Wv.T).reshape(B, T, nh, hs).transpose(0, 2, 1, 3)
        att = (q @ jnp.swapaxes(k, -2, -1)) * (1.0 / math.sqrt(hs))
        mask = jnp.tril(jnp.ones((T, T)))
        att = jnp.where(mask == 0, -jnp.inf, att)
        att = jax.nn.softmax(att, axis=-1)
        y = att @ v
        y = y.transpose(0, 2, 1, 3).reshape(B, T, C)
        return y @ self.Wp.T + self.bp


if __name__ == "__main__":
    # small shapes consistent with the module: B=2, T=8, n_embd=32, n_head=4
    B, T, n_embd, n_head, block_size = 2, 8, 32, 4, 16
    key = jax.random.PRNGKey(0)
    kx, kp = jax.random.split(key)
    x = jax.random.normal(kx, (B, T, n_embd), dtype=jnp.float32)

    # f32 compute path (exact reciprocal -> tight tolerance)
    mha = MultiHeadAttentionPallas(n_embd, n_head, dropout=0.0,
                                   block_size=block_size, key=kp,
                                   compute_dtype=jnp.float32)
    out = jax.block_until_ready(mha(x))
    ref = mha.reference(x)
    assert out.shape == (B, T, n_embd)
    assert jnp.allclose(out, ref, atol=2e-3, rtol=2e-3), "f32 mismatch vs reference"

    # bf16 MXU path (softmax / accumulation stay f32) -- loose tolerance
    mha_bf16 = MultiHeadAttentionPallas(n_embd, n_head, dropout=0.0,
                                        block_size=block_size, key=kp,
                                        compute_dtype=jnp.bfloat16)
    out_bf16 = jax.block_until_ready(mha_bf16(x))
    assert out_bf16.shape == (B, T, n_embd)
    assert jnp.allclose(out_bf16.astype(jnp.float32), ref, atol=1e-1, rtol=1e-1), \
        "bf16 mismatch vs reference"

    print("KERNEL_OK")
</pallas_src>

<mosaic_0001>
module attributes {stable_mosaic.version = 11 : i64} {
  func.func @_qkv_kernel(%arg0: i32, %arg1: memref<16x32xf32, #tpu.memory_space<vmem>>, %arg2: memref<32x96xf32, #tpu.memory_space<vmem>>, %arg3: memref<16x32xf32, #tpu.memory_space<vmem>>, %arg4: memref<16x32xf32, #tpu.memory_space<vmem>>, %arg5: memref<16x32xf32, #tpu.memory_space<vmem>>) attributes {dimension_semantics = [#tpu.dimension_semantics<parallel>], iteration_bounds = array<i64: 1>, scalar_prefetch = 0 : i64, scratch_operands = 0 : i64, tpu.core_type = #tpu.core_type<tc>, window_params = [{transform_indices = @transform_0, window_bounds = array<i64: 16, 32>}, {pipeline_mode = #tpu.pipeline_mode<synchronous>, transform_indices = @transform_1, window_bounds = array<i64: 32, 96>}, {transform_indices = @transform_2, window_bounds = array<i64: 16, 32>}, {transform_indices = @transform_3, window_bounds = array<i64: 16, 32>}, {transform_indices = @transform_4, window_bounds = array<i64: 16, 32>}]} {
    %c0 = arith.constant 0 : index
    %c0_0 = arith.constant 0 : index
    %0 = vector.load %arg1[%c0, %c0_0] : memref<16x32xf32, #tpu.memory_space<vmem>>, vector<16x32xf32>
    %c0_1 = arith.constant 0 : index
    %c0_2 = arith.constant 0 : index
    %1 = vector.load %arg2[%c0_1, %c0_2] : memref<32x96xf32, #tpu.memory_space<vmem>>, vector<32x96xf32>
    %cst = arith.constant dense<0.000000e+00> : vector<16x96xf32>
    %2 = tpu.matmul %0, %1, %cst {dimension_numbers = #tpu.dot_dimension_numbers<[1], [0], [0], [1], [0, 0, 1, 1], [], []>} : vector<16x32xf32>, vector<32x96xf32>, vector<16x96xf32> -> vector<16x96xf32>
    %3 = vector.extract_strided_slice %2 {offsets = [0, 0], sizes = [16, 32], strides = [1, 1]} : vector<16x96xf32> to vector<16x32xf32>
    %c0_3 = arith.constant 0 : index
    %c0_4 = arith.constant 0 : index
    %4 = vector.load %arg3[%c0_3, %c0_4] : memref<16x32xf32, #tpu.memory_space<vmem>>, vector<16x32xf32>
    tpu.vector_store %arg3[%c0_3, %c0_4], %3 {strides = array<i32>} : memref<16x32xf32, #tpu.memory_space<vmem>>, vector<16x32xf32>,
    %5 = vector.extract_strided_slice %2 {offsets = [0, 32], sizes = [16, 32], strides = [1, 1]} : vector<16x96xf32> to vector<16x32xf32>
    %c0_5 = arith.constant 0 : index
    %c0_6 = arith.constant 0 : index
    %6 = vector.load %arg4[%c0_5, %c0_6] : memref<16x32xf32, #tpu.memory_space<vmem>>, vector<16x32xf32>
    tpu.vector_store %arg4[%c0_5, %c0_6], %5 {strides = array<i32>} : memref<16x32xf32, #tpu.memory_space<vmem>>, vector<16x32xf32>,
    %7 = vector.extract_strided_slice %2 {offsets = [0, 64], sizes = [16, 32], strides = [1, 1]} : vector<16x96xf32> to vector<16x32xf32>
    %c0_7 = arith.constant 0 : index
    %c0_8 = arith.constant 0 : index
    %8 = vector.load %arg5[%c0_7, %c0_8] : memref<16x32xf32, #tpu.memory_space<vmem>>, vector<16x32xf32>
    tpu.vector_store %arg5[%c0_7, %c0_8], %7 {strides = array<i32>} : memref<16x32xf32, #tpu.memory_space<vmem>>, vector<16x32xf32>,
    return
  }
  func.func @transform_0(%arg0: i32) -> (i32, i32) {
    %c0_i32 = arith.constant 0 : i32
    %c0_i32_0 = arith.constant 0 : i32
    return %arg0, %c0_i32 : i32, i32
  }
  func.func @transform_1(%arg0: i32) -> (i32, i32) {
    %c0_i32 = arith.constant 0 : i32
    %c0_i32_0 = arith.constant 0 : i32
    %c0_i32_1 = arith.constant 0 : i32
    return %c0_i32, %c0_i32_0 : i32, i32
  }
  func.func @transform_2(%arg0: i32) -> (i32, i32) {
    %c0_i32 = arith.constant 0 : i32
    %c0_i32_0 = arith.constant 0 : i32
    return %arg0, %c0_i32 : i32, i32
  }
  func.func @transform_3(%arg0: i32) -> (i32, i32) {
    %c0_i32 = arith.constant 0 : i32
    %c0_i32_0 = arith.constant 0 : i32
    return %arg0, %c0_i32 : i32, i32
  }
  func.func @transform_4(%arg0: i32) -> (i32, i32) {
    %c0_i32 = arith.constant 0 : i32
    %c0_i32_0 = arith.constant 0 : i32
    return %arg0, %c0_i32 : i32, i32
  }
}

</mosaic_0001>

<bundles_post_ra>
// kernel: tpu_custom_call.1
= control target key start
LH: loop header
LB: loop body
LE: loop exit
PB: predicated region body
PF: predicated region fallthrough
CT: control target
= control target key end

     0   :  { %10 = vsyncpa [#allocation3], 0  ;;  %s479_s0 = inlined_call_operand.hbm [shape: f32[16,32], index: 0, kind: input, shape index: {}]   ;;  %s480_s1 = inlined_call_operand.hbm [shape: f32[32,96], index: 1, kind: input, shape index: {}]   ;;  %s481_s2 = inlined_call_operand.hbm [shape: f32[16,32], index: 2, kind: output, shape index: {0}]   ;;  %s482_s3 = inlined_call_operand.hbm [shape: f32[16,32], index: 3, kind: output, shape index: {1}]   ;;  %s483_s4 = inlined_call_operand.hbm [shape: f32[16,32], index: 4, kind: output, shape index: {2}]  }
   0x1   :  { %11 = vsyncpa [#allocation6], 0 }
   0x2   :  { %12 = vsyncpa [#allocation4], 0 }
   0x3   :  { %13 = vsyncpa [#allocation9], 0  ;;  %s355_s15 = smov [#allocation2]   ;;  %s237_s19 = scalar_lea.hbm %s479_s0, 256 }
   0x4   :  { %s19_s16 = sshll.u32 %s355_s15, 4  ;;  %p238_p0 = scmp.ne.s32.totalorder %s479_s0, %s237_s19  ;;  %s20_s16 = int_to_ptr.vmem [resolvable:$true] %s19_s16 }
   0x5   :  { %p241_p1 = scmp.lt.u32.totalorder %s237_s19, %s479_s0 }
   0x7   :  { %p243_p2 = pnand %p241_p1, %p238_p0 }
   0x9   :  { %246 = shalt.err (!%p243_p2)
}
   0xa   :  { %s247_s24 = scalar_lea.vmem %s20_s16, 256  ;;  %p252_p4 = scmp.lt.s32.totalorder %s20_s16, %s20_s16 }
   0xb   :  { %p248_p3 = scmp.ne.s32.totalorder %s20_s16, %s247_s24  ;;  %p253_p5 = scmp.lt.s32.totalorder %s247_s24, %s247_s24 }
   0xd   :  { %p254_p6 = por %p253_p5, %p252_p4 }
   0xf   :  { %p255_p7 = pnand %p254_p6, %p248_p3 }
  0x11   :  { %258 = shalt.err (!%p255_p7)
}
  0x12   :  { %s356_s25 = smov 128   ;;  %s357_s26 = smov 8  }
  0x13   :  { %25 = dma.hbm_to_vmem [thread:$0]  %s479_s0, 256, %s20_s16, [#allocation3], %s356_s25, %s356_s25, %s357_s26  }
  0x14   :  { %s358_s29 = smov [#allocation5]   ;;  %s259_s7 = scalar_lea.hbm %s480_s1, 512 }
  0x15   :  { %s31_s30 = sshll.u32 %s358_s29, 4  ;;  %p260_p8 = scmp.ne.s32.totalorder %s480_s1, %s259_s7  ;;  %s32_s30 = int_to_ptr.vmem [resolvable:$true] %s31_s30 }
  0x16   :  { %p263_p9 = scmp.lt.u32.totalorder %s259_s7, %s480_s1 }
  0x18   :  { %p265_p10 = pnand %p263_p9, %p260_p8 }
  0x1a   :  { %268 = shalt.err (!%p265_p10)
}
  0x1b   :  { %s269_s12 = scalar_lea.vmem %s32_s30, 512  ;;  %p274_p12 = scmp.lt.s32.totalorder %s32_s30, %s32_s30 }
  0x1c   :  { %p270_p11 = scmp.ne.s32.totalorder %s32_s30, %s269_s12  ;;  %p275_p13 = scmp.lt.s32.totalorder %s269_s12, %s269_s12 }
  0x1e   :  { %p276_p0 = por %p275_p13, %p274_p12 }
  0x20   :  { %p277_p1 = pnand %p276_p0, %p270_p11 }
  0x22   :  { %280 = shalt.err (!%p277_p1)
}
  0x23   :  { %37 = dma.hbm_to_vmem [thread:$0]  %s480_s1, 512, %s32_s30, [#allocation6], %s356_s25, %s356_s25, %s357_s26  }
  0x24   :  { %347 = dma.done.wait [#allocation3], 256  }
  0x25   :  { %348 = vsyncadd [#allocation3], 4294967040 }
  0x26   :  { %349 = dma.done.wait [#allocation6], 512  }
  0x27   :  { %350 = vsyncadd [#allocation6], 4294966784  ;;  %vm50_vm0 = vcmask 261120   ;;  %v46_v0 = vld [vmem:[#allocation5] sm:$0xff]  ;;  %v47_v1 = vld [vmem:[#allocation5 + $0x8] sm:$0xff]  ;;  %s359_s1 = smov [#allocation7]  }
  0x28   :  { %v48_v2 = vld [vmem:[#allocation5 + $0x10] sm:$0xff]  ;;  %v220_v3 = vpack.c.bf16 %v47_v1, %v46_v0  ;;  %v49_v4 = vld [vmem:[#allocation5 + $0x18] sm:$0xff]  ;;  %s157_s14 = sshll.u32 %s359_s1, 4  ;;  %s360_s15 = smov 64   ;;  %s158_s14 = int_to_ptr.vmem [resolvable:$true] %s157_s14 }
  0x29   :  { %v44_v5 = vld [vmem:[#allocation2] sm:$0xff]  ;;  %v224_v6 = vpack.c.bf16 %v49_v4, %v48_v2  ;;  %v45_v7 = vld [vmem:[#allocation2 + $0x8] sm:$0xff]  ;;  %s361_s16 = smov 96   ;;  %s281_s17 = scalar_lea.vmem %s158_s14, 256 }
  0x2a   :  { %217 = vmatprep.mubr.msk.f32.mxu0 %vm50_vm0, %v44_v5  ;;  %221 = vmatprep.subr.bf16.mxu0 %v220_v3  ;;  %p282_p2 = scmp.ne.s32.totalorder %s158_s14, %s281_s17  ;;  %p286_p3 = scmp.lt.s32.totalorder %s158_s14, %s158_s14 }
  0x2b   :  { %223 = vmatpush3.bf16.msra.mxu0 %v220_v3  ;;  %p287_p4 = scmp.lt.s32.totalorder %s281_s17, %s281_s17 }
  0x2c   :  { %225 = vmatprep.subr.bf16.mxu0 %v224_v6 }
  0x2d   :  { %p288_p5 = por %p287_p4, %p286_p3 }
  0x2f   :  { %227 = vmatpush3.bf16.msra.mxu0 %v224_v6  ;;  %p289_p6 = pnand %p288_p5, %p282_p2 }
  0x32   :  { %218 = vmatmul.mubr.msk.f32.vlgmr.msra.gmra.mrb[0].mxu0 %vm50_vm0, %v45_v7 }
 0x105   :  { %v219_v8 = vpop.f32.mrb[0].mxu0 }
 0x106   :  { %133 = vst.msk [vmem:[#allocation7 + $0x8] sm:$0xff] %vm50_vm0, %v219_v8  ;;  %v123_v9 = vpop.f32.mrb[1].mxu0 }
 0x107   :  { %132 = vst.msk [vmem:[#allocation7] sm:$0xff] %vm50_vm0, %v123_v9  ;;  %144 = vrot.lane.b32.xlu1 %v123_v9, %s360_s15  ;;  %136 = vrot.lane.b32.xlu0 %v123_v9, %s361_s16 }
 0x108   :  { %292 = shalt.err (!%p289_p6)
}
 0x109   :  { %s293_s20 = scalar_lea.hbm %s481_s2, 256 }
 0x10a   :  { %p294_p7 = scmp.ne.s32.totalorder %s481_s2, %s293_s20  ;;  %p297_p8 = scmp.lt.u32.totalorder %s293_s20, %s481_s2 }
 0x10c   :  { %p299_p9 = pnand %p297_p8, %p294_p7 }
 0x10e   :  { %302 = shalt.err (!%p299_p9)
}
 0x10f   :  { %163 = dma.vmem_to_hbm [thread:$0]  %s158_s14, 256, %s481_s2, [#allocation4], %s356_s25, %s356_s25, %s357_s26  }
 0x110   :  { %146 = vrot.lane.b32.xlu1 %v219_v8, %s360_s15  ;;  %138 = vrot.lane.b32.xlu0 %v219_v8, %s361_s16  ;;  %s362_s29 = smov [#allocation8]   ;;  %s363_s5 = smov [#allocation10]  }
 0x111   :  { %s169_s30 = sshll.u32 %s362_s29, 4  ;;  %s181_s6 = sshll.u32 %s363_s5, 4  ;;  %s170_s30 = int_to_ptr.vmem [resolvable:$true] %s169_s30  ;;  %s440_s6 = int_to_ptr.vmem [resolvable:$true] %s181_s6 }
 0x112   :  { %s303_s2 = scalar_lea.vmem %s170_s30, 256  ;;  %p308_p11 = scmp.lt.s32.totalorder %s170_s30, %s170_s30 }
 0x113   :  { %p304_p10 = scmp.ne.s32.totalorder %s170_s30, %s303_s2  ;;  %p309_p12 = scmp.lt.s32.totalorder %s303_s2, %s303_s2 }
 0x115   :  { %p310_p13 = por %p309_p12, %p308_p11 }
 0x117   :  { %p311_p0 = pnand %p310_p13, %p304_p10 }
 0x179   :  { %v145_v10 = vpop.permute.xlu1 %144  ;;  %v137_v11 = vpop.permute.xlu0 %136 }
 0x17a   :  { %150 = vst.msk [vmem:[#allocation10] sm:$0xff] %vm50_vm0, %v145_v10  ;;  %142 = vst.msk [vmem:[#allocation8] sm:$0xff] %vm50_vm0, %v137_v11 }
 0x182   :  { %v147_v12 = vpop.permute.xlu1 %146  ;;  %v139_v13 = vpop.permute.xlu0 %138 }
 0x183   :  { %151 = vst.msk [vmem:[#allocation10 + $0x8] sm:$0xff] %vm50_vm0, %v147_v12  ;;  %143 = vst.msk [vmem:[#allocation8 + $0x8] sm:$0xff] %vm50_vm0, %v139_v13 }
 0x184   :  { %314 = shalt.err (!%p311_p0)
}
 0x185   :  { %s315_s9 = scalar_lea.hbm %s482_s3, 256 }
 0x186   :  { %p316_p1 = scmp.ne.s32.totalorder %s482_s3, %s315_s9  ;;  %p319_p2 = scmp.lt.u32.totalorder %s315_s9, %s482_s3 }
 0x188   :  { %p321_p3 = pnand %p319_p2, %p316_p1 }
 0x18a   :  { %324 = shalt.err (!%p321_p3)
}
 0x18b   :  { %175 = dma.vmem_to_hbm [thread:$0]  %s170_s30, 256, %s482_s3, [#allocation9], %s356_s25, %s356_s25, %s357_s26  }
 0x18c   :  { %s325_s14 = scalar_lea.vmem %s440_s6, 256  ;;  %p330_p5 = scmp.lt.s32.totalorder %s440_s6, %s440_s6 }
 0x18d   :  { %p326_p4 = scmp.ne.s32.totalorder %s440_s6, %s325_s14  ;;  %p331_p6 = scmp.lt.s32.totalorder %s325_s14, %s325_s14 }
 0x18f   :  { %p332_p7 = por %p331_p6, %p330_p5 }
 0x191   :  { %p333_p8 = pnand %p332_p7, %p326_p4 }
 0x193   :  { %336 = shalt.err (!%p333_p8)
}
 0x194   :  { %s337_s17 = scalar_lea.hbm %s483_s4, 256 }
 0x195   :  { %p338_p9 = scmp.ne.s32.totalorder %s483_s4, %s337_s17  ;;  %p341_p10 = scmp.lt.u32.totalorder %s337_s17, %s483_s4 }
 0x197   :  { %p343_p11 = pnand %p341_p10, %p338_p9 }
 0x199   :  { %346 = shalt.err (!%p343_p11)
}
 0x19a   :  { %187 = dma.vmem_to_hbm [thread:$0]  %s440_s6, 256, %s483_s4, [#allocation9], %s356_s25, %s356_s25, %s357_s26  }
 0x19b   :  { %351 = dma.done.wait [#allocation4], 256  }
 0x19c   :  { %352 = vsyncadd [#allocation4], 4294967040 }
 0x19d   :  { %353 = dma.done.wait [#allocation9], 512  }
 0x19e   :  { %354 = vsyncadd [#allocation9], 4294966784 }
 0x19f   :  { %197 = vsyncpa [#allocation3], 1 }
 0x1a0   :  { %198 = vsyncpa [#allocation6], 1 }
 0x1a1   :  { %199 = vsyncpa [#allocation4], 1 }
 0x1a2   :  { %200 = vsyncpa [#allocation9], 1 }

</bundles_post_ra>
